<compile_context>
chip_gen: v7x
topology: tpu7x:2x2x1
jax: 0.10.0
libtpu: 0.0.40
codegen_flags: <defaults>
</compile_context>

<pallas_src>
import functools

import jax
import jax.numpy as jnp
from jax.experimental import pallas as pl
from jax.experimental.pallas import tpu as pltpu


def _wce_kernel(w_ref, logits_ref, target_ref,
                out_loss_ref, out_w_ref,
                sum_loss, sum_w,
                *, ignore_index: int, num_classes: int,
                h_per_split: int, num_h_total: int, h_rem: int):
    h = pl.program_id(2)

    @pl.when(h == 0)
    def _init():
        sum_loss[...] = jnp.zeros_like(sum_loss)
        sum_w[...] = jnp.zeros_like(sum_w)

    t = target_ref[...]                                   # (tile_h, W) int32

    # validity mask: ignored pixels everywhere; out-of-range rows only matter
    # on the globally-last H tile and only if a ragged tail exists (static).
    valid = t != ignore_index
    if h_rem:
        g_tile = pl.program_id(0) * h_per_split + h
        row = jax.lax.broadcasted_iota(jnp.int32, t.shape, 0)
        valid = valid & ((row < h_rem) | (g_tile != num_h_total - 1))

    # ---- numerically stable log-softmax over C, unrolled on the VPU ----
    # pass 1: running max over classes
    m = logits_ref[0].astype(jnp.float32)                 # (tile_h, W)
    for c in range(1, num_classes):
        m = jnp.maximum(m, logits_ref[c].astype(jnp.float32))

    # pass 2: sum-exp, gather target logit, per-pixel class weight.
    # (targets with value >= C that are not ignore_index contribute weight 0 —
    #  acceptable edge-case deviation from torch, which would error/garbage.)
    ssum = jnp.zeros_like(m)
    picked = jnp.zeros_like(m)
    w_pix = jnp.zeros_like(m)
    for c in range(num_classes):
        xc = logits_ref[c].astype(jnp.float32)
        ssum = ssum + jnp.exp(xc - m)
        sel = t == c
        picked = jnp.where(sel, xc, picked)
        w_pix = jnp.where(sel, w_ref[c], w_pix)           # scalar from SMEM

    nll = jnp.log(ssum) + m - picked                      # -log_softmax[target]
    w_pix = jnp.where(valid, w_pix, 0.0)

    # mask before accumulating so garbage (Inf/NaN) logits in padded regions
    # never poison the running sums
    sum_loss[...] += jnp.where(valid, w_pix * nll, 0.0)
    sum_w[...] += w_pix

    @pl.when(h == pl.num_programs(2) - 1)
    def _finalize():
        out_loss_ref[...] = jnp.zeros_like(out_loss_ref) + jnp.sum(sum_loss[...])
        out_w_ref[...] = jnp.zeros_like(out_w_ref) + jnp.sum(sum_w[...])


def weighted_cross_entropy(logits, target, class_weights, ignore_index,
                           *, tile_h=None):
    """logits: (N, C, H, W) any float dtype; target: (N, H, W) int; class_weights: (C,)."""
    N, C, H, W = logits.shape
    assert target.shape == (N, H, W)

    t = target.astype(jnp.int32)
    # TODO(synk): on v5e, accept int16 targets (upcast in-kernel) to shave
    # target HBM traffic when C and ignore_index fit.
    w = jnp.asarray(class_weights, jnp.float32).reshape(C)
    itemsize = jnp.dtype(logits.dtype).itemsize

    # --- generation-aware sizing -------------------------------------------
    try:
        vmem_phys = int(pltpu.get_tpu_info().vmem_capacity_bytes)
    except Exception:  # interpret mode / unknown platform
        vmem_phys = 64 << 20                       # conservative (v7x per-core)
    per_buf_cap = max(256 << 10, vmem_phys // 16)  # ~8 MiB v5e/v6e, ~4 MiB v7x

    if tile_h is None:
        tile_h = per_buf_cap // max(C * W * itemsize, 1)
    if tile_h >= H:
        tile_h = H                                  # full extent: no (8) constraint
    else:
        tile_h = max(8, (tile_h // 8) * 8)          # tiled: must be multiple of 8
    num_h = pl.cdiv(H, tile_h)
    h_rem = H % tile_h

    # keep both v7x TensorCores busy when the batch alone cannot (harmless on
    # single-core v5e/v6e: the extra axis is just one more loop level of size 1/2)
    n_split = 2 if (N == 1 and num_h >= 2 and num_h % 2 == 0) else 1
    h_per_split = num_h // n_split

    # --- explicit VMEM budget, accounting for sublane/lane padding ----------
    pw = pl.cdiv(W, 128) * 128
    sub = max(1, 32 // itemsize)                    # 8 for f32, 16 for bf16
    ph = pl.cdiv(tile_h, sub) * sub
    ph32 = pl.cdiv(tile_h, 8) * 8
    vmem_need = (2 * C * ph * pw * itemsize         # logits (double-buffered)
                 + 2 * ph32 * pw * 4                # targets (int32, double-buffered)
                 + 2 * ph32 * pw * 4                # two f32 accumulator scratches
                 + 2 * 2 * 8 * 128 * 4)             # two (8,128) outputs, double-buffered
    vmem_limit = max(int(vmem_need * 1.25) + (2 << 20), 32 << 20)
    vmem_limit = min(vmem_limit, int(vmem_phys * 0.7), 64 << 20)

    kernel = functools.partial(
        _wce_kernel, ignore_index=int(ignore_index), num_classes=C,
        h_per_split=h_per_split, num_h_total=num_h, h_rem=h_rem)

    out_loss, out_w = pl.pallas_call(
        kernel,
        out_shape=(jax.ShapeDtypeStruct((n_split, N, 8, 128), jnp.float32),
                   jax.ShapeDtypeStruct((n_split, N, 8, 128), jnp.float32)),
        grid_spec=pltpu.PrefetchScalarGridSpec(
            num_scalar_prefetch=0,
            grid=(n_split, N, h_per_split),
            in_specs=[
                # class weights: whole (C,) array resident in SMEM
                pl.BlockSpec(memory_space=pltpu.MemorySpace.SMEM),
                # logits: native NCHW, (C, tile_h, W) block, W stays lane-dense
                pl.BlockSpec((None, C, tile_h, W),
                             lambda s, n, h: (n, 0, s * h_per_split + h, 0)),
                # targets: native NHW, (tile_h, W) block
                pl.BlockSpec((None, tile_h, W),
                             lambda s, n, h: (n, s * h_per_split + h, 0)),
            ],
            out_specs=[
                pl.BlockSpec((None, None, 8, 128), lambda s, n, h: (s, n, 0, 0)),
                pl.BlockSpec((None, None, 8, 128), lambda s, n, h: (s, n, 0, 0)),
            ],
            scratch_shapes=[pltpu.VMEM((tile_h, W), jnp.float32),
                            pltpu.VMEM((tile_h, W), jnp.float32)],
        ),
        compiler_params=pltpu.CompilerParams(
            dimension_semantics=("parallel", "parallel", "arbitrary"),
            vmem_limit_bytes=int(vmem_limit)),
    )(w, logits, t)

    total_loss = jnp.sum(out_loss[:, :, 0, 0])
    total_w = jnp.sum(out_w[:, :, 0, 0])
    # 0/0 -> NaN matches torch.nn.CrossEntropyLoss when every pixel is ignored
    return total_loss / total_w


def _reference(logits, target, class_weights, ignore_index):
    # pure-JAX reference mirroring torch.nn.CrossEntropyLoss(weight=..., ignore_index=...)
    N, C, H, W = logits.shape
    x = jnp.transpose(logits, (0, 2, 3, 1)).reshape(-1, C).astype(jnp.float32)
    t = target.reshape(-1).astype(jnp.int32)
    logp = jax.nn.log_softmax(x, axis=-1)
    t_safe = jnp.clip(t, 0, C - 1)
    nll = -jnp.take_along_axis(logp, t_safe[:, None], axis=-1)[:, 0]
    w = jnp.asarray(class_weights, jnp.float32)[t_safe]
    valid = (t != ignore_index).astype(jnp.float32)
    w = w * valid
    return jnp.sum(w * nll) / jnp.sum(w)


if __name__ == "__main__":
    key = jax.random.PRNGKey(0)
    k_logits, k_target, k_mask = jax.random.split(key, 3)

    N, C, H, W = 2, 4, 16, 16
    ignore_index = 255
    # class pixel distribution from the module's __init__ -> weights = 1/d (0 if d==0)
    distribution = [0.5, 0.2, 0.0, 0.3]
    class_weights = [1.0 / d if d != 0 else 0.0 for d in distribution]

    logits = jax.random.normal(k_logits, (N, C, H, W), jnp.float32)
    target = jax.random.randint(k_target, (N, H, W), 0, C, jnp.int32)
    # sprinkle in some ignored pixels
    ignore_mask = jax.random.bernoulli(k_mask, 0.1, (N, H, W))
    target = jnp.where(ignore_mask, ignore_index, target)

    loss = weighted_cross_entropy(logits, target, class_weights, ignore_index)
    loss = jax.block_until_ready(loss)

    ref = _reference(logits, target, class_weights, ignore_index)
    assert jnp.allclose(loss, ref, rtol=1e-5, atol=1e-5), (loss, ref)

    print("KERNEL_OK")
</pallas_src>

<mosaic_0001>
module attributes {stable_mosaic.version = 11 : i64} {
  func.func @_wce_kernel(%arg0: i32, %arg1: i32, %arg2: i32, %arg3: memref<4xf32, #tpu.memory_space<smem>>, %arg4: memref<1x4x16x16xf32, #tpu.memory_space<vmem>>, %arg5: memref<1x16x16xi32, #tpu.memory_space<vmem>>, %arg6: memref<1x1x8x128xf32, #tpu.memory_space<vmem>>, %arg7: memref<1x1x8x128xf32, #tpu.memory_space<vmem>>, %arg8: memref<16x16xf32, #tpu.memory_space<vmem>>, %arg9: memref<16x16xf32, #tpu.memory_space<vmem>>) attributes {dimension_semantics = [#tpu.dimension_semantics<parallel>, #tpu.dimension_semantics<parallel>, #tpu.dimension_semantics<arbitrary>], iteration_bounds = array<i64: 1, 2, 1>, scalar_prefetch = 0 : i64, scratch_operands = 2 : i64, tpu.core_type = #tpu.core_type<tc>, window_params = [{transform_indices = @transform_0, window_bounds = array<i64: 4>}, {transform_indices = @transform_1, window_bounds = array<i64: 1, 4, 16, 16>}, {transform_indices = @transform_2, window_bounds = array<i64: 1, 16, 16>}, {transform_indices = @transform_3, window_bounds = array<i64: 1, 1, 8, 128>}, {transform_indices = @transform_4, window_bounds = array<i64: 1, 1, 8, 128>}]} {
    %c0_i32 = arith.constant 0 : i32
    %0 = arith.cmpi eq, %arg2, %c0_i32 : i32
    %1 = arith.extui %0 : i1 to i32
    %c0_i32_0 = arith.constant 0 : i32
    %2 = arith.cmpi ne, %1, %c0_i32_0 : i32
    scf.if %2 {
      %cst_51 = arith.constant 0.000000e+00 : f32
      %82 = vector.broadcast %cst_51 : f32 to vector<16x16xf32>
      %c0_52 = arith.constant 0 : index
      %c0_53 = arith.constant 0 : index
      %83 = vector.load %arg8[%c0_52, %c0_53] : memref<16x16xf32, #tpu.memory_space<vmem>>, vector<16x16xf32>
      tpu.vector_store %arg8[%c0_52, %c0_53], %82 {strides = array<i32>} : memref<16x16xf32, #tpu.memory_space<vmem>>, vector<16x16xf32>,
      %cst_54 = arith.constant 0.000000e+00 : f32
      %84 = vector.broadcast %cst_54 : f32 to vector<16x16xf32>
      %c0_55 = arith.constant 0 : index
      %c0_56 = arith.constant 0 : index
      %85 = vector.load %arg9[%c0_55, %c0_56] : memref<16x16xf32, #tpu.memory_space<vmem>>, vector<16x16xf32>
      tpu.vector_store %arg9[%c0_55, %c0_56], %84 {strides = array<i32>} : memref<16x16xf32, #tpu.memory_space<vmem>>, vector<16x16xf32>,
    } else {
    }
    %c0 = arith.constant 0 : index
    %c0_1 = arith.constant 0 : index
    %c0_2 = arith.constant 0 : index
    %3 = vector.load %arg5[%c0, %c0_1, %c0_2] : memref<1x16x16xi32, #tpu.memory_space<vmem>>, vector<1x16x16xi32>
    %4 = vector.shape_cast %3 : vector<1x16x16xi32> to vector<16x16xi32>
    %c255_i32 = arith.constant 255 : i32
    %5 = vector.broadcast %c255_i32 : i32 to vector<16x16xi32>
    %6 = arith.cmpi ne, %4, %5 : vector<16x16xi32>
    %c0_3 = arith.constant 0 : index
    %c0_4 = arith.constant 0 : index
    %c0_5 = arith.constant 0 : index
    %c0_6 = arith.constant 0 : index
    %7 = vector.load %arg4[%c0_3, %c0_4, %c0_5, %c0_6] : memref<1x4x16x16xf32, #tpu.memory_space<vmem>>, vector<1x1x16x16xf32>
    %8 = vector.shape_cast %7 : vector<1x1x16x16xf32> to vector<16x16xf32>
    %c0_7 = arith.constant 0 : index
    %c1 = arith.constant 1 : index
    %c0_8 = arith.constant 0 : index
    %c0_9 = arith.constant 0 : index
    %9 = vector.load %arg4[%c0_7, %c1, %c0_8, %c0_9] : memref<1x4x16x16xf32, #tpu.memory_space<vmem>>, vector<1x1x16x16xf32>
    %10 = vector.shape_cast %9 : vector<1x1x16x16xf32> to vector<16x16xf32>
    %11 = arith.maximumf %8, %10 : vector<16x16xf32>
    %c0_10 = arith.constant 0 : index
    %c2 = arith.constant 2 : index
    %c0_11 = arith.constant 0 : index
    %c0_12 = arith.constant 0 : index
    %12 = vector.load %arg4[%c0_10, %c2, %c0_11, %c0_12] : memref<1x4x16x16xf32, #tpu.memory_space<vmem>>, vector<1x1x16x16xf32>
    %13 = vector.shape_cast %12 : vector<1x1x16x16xf32> to vector<16x16xf32>
    %14 = arith.maximumf %11, %13 : vector<16x16xf32>
    %c0_13 = arith.constant 0 : index
    %c3 = arith.constant 3 : index
    %c0_14 = arith.constant 0 : index
    %c0_15 = arith.constant 0 : index
    %15 = vector.load %arg4[%c0_13, %c3, %c0_14, %c0_15] : memref<1x4x16x16xf32, #tpu.memory_space<vmem>>, vector<1x1x16x16xf32>
    %16 = vector.shape_cast %15 : vector<1x1x16x16xf32> to vector<16x16xf32>
    %17 = arith.maximumf %14, %16 : vector<16x16xf32>
    %cst = arith.constant 0.000000e+00 : f32
    %18 = vector.broadcast %cst : f32 to vector<16x16xf32>
    %cst_16 = arith.constant 0.000000e+00 : f32
    %19 = vector.broadcast %cst_16 : f32 to vector<16x16xf32>
    %cst_17 = arith.constant 0.000000e+00 : f32
    %20 = vector.broadcast %cst_17 : f32 to vector<16x16xf32>
    %c0_18 = arith.constant 0 : index
    %c0_19 = arith.constant 0 : index
    %c0_20 = arith.constant 0 : index
    %c0_21 = arith.constant 0 : index
    %21 = vector.load %arg4[%c0_18, %c0_19, %c0_20, %c0_21] : memref<1x4x16x16xf32, #tpu.memory_space<vmem>>, vector<1x1x16x16xf32>
    %22 = vector.shape_cast %21 : vector<1x1x16x16xf32> to vector<16x16xf32>
    %23 = arith.subf %22, %17 : vector<16x16xf32>
    %24 = math.exp %23 : vector<16x16xf32>
    %25 = arith.addf %18, %24 : vector<16x16xf32>
    %c0_i32_22 = arith.constant 0 : i32
    %26 = vector.broadcast %c0_i32_22 : i32 to vector<16x16xi32>
    %27 = arith.cmpi eq, %4, %26 : vector<16x16xi32>
    %28 = arith.select %27, %22, %19 : vector<16x16xi1>, vector<16x16xf32>
    %c0_23 = arith.constant 0 : index
    %29 = memref.load %arg3[%c0_23] : memref<4xf32, #tpu.memory_space<smem>>
    %30 = vector.broadcast %29 : f32 to vector<16x16xf32>
    %31 = arith.select %27, %30, %20 : vector<16x16xi1>, vector<16x16xf32>
    %c0_24 = arith.constant 0 : index
    %c1_25 = arith.constant 1 : index
    %c0_26 = arith.constant 0 : index
    %c0_27 = arith.constant 0 : index
    %32 = vector.load %arg4[%c0_24, %c1_25, %c0_26, %c0_27] : memref<1x4x16x16xf32, #tpu.memory_space<vmem>>, vector<1x1x16x16xf32>
    %33 = vector.shape_cast %32 : vector<1x1x16x16xf32> to vector<16x16xf32>
    %34 = arith.subf %33, %17 : vector<16x16xf32>
    %35 = math.exp %34 : vector<16x16xf32>
    %36 = arith.addf %25, %35 : vector<16x16xf32>
    %c1_i32 = arith.constant 1 : i32
    %37 = vector.broadcast %c1_i32 : i32 to vector<16x16xi32>
    %38 = arith.cmpi eq, %4, %37 : vector<16x16xi32>
    %39 = arith.select %38, %33, %28 : vector<16x16xi1>, vector<16x16xf32>
    %c1_28 = arith.constant 1 : index
    %40 = memref.load %arg3[%c1_28] : memref<4xf32, #tpu.memory_space<smem>>
    %41 = vector.broadcast %40 : f32 to vector<16x16xf32>
    %42 = arith.select %38, %41, %31 : vector<16x16xi1>, vector<16x16xf32>
    %c0_29 = arith.constant 0 : index
    %c2_30 = arith.constant 2 : index
    %c0_31 = arith.constant 0 : index
    %c0_32 = arith.constant 0 : index
    %43 = vector.load %arg4[%c0_29, %c2_30, %c0_31, %c0_32] : memref<1x4x16x16xf32, #tpu.memory_space<vmem>>, vector<1x1x16x16xf32>
    %44 = vector.shape_cast %43 : vector<1x1x16x16xf32> to vector<16x16xf32>
    %45 = arith.subf %44, %17 : vector<16x16xf32>
    %46 = math.exp %45 : vector<16x16xf32>
    %47 = arith.addf %36, %46 : vector<16x16xf32>
    %c2_i32 = arith.constant 2 : i32
    %48 = vector.broadcast %c2_i32 : i32 to vector<16x16xi32>
    %49 = arith.cmpi eq, %4, %48 : vector<16x16xi32>
    %50 = arith.select %49, %44, %39 : vector<16x16xi1>, vector<16x16xf32>
    %c2_33 = arith.constant 2 : index
    %51 = memref.load %arg3[%c2_33] : memref<4xf32, #tpu.memory_space<smem>>
    %52 = vector.broadcast %51 : f32 to vector<16x16xf32>
    %53 = arith.select %49, %52, %42 : vector<16x16xi1>, vector<16x16xf32>
    %c0_34 = arith.constant 0 : index
    %c3_35 = arith.constant 3 : index
    %c0_36 = arith.constant 0 : index
    %c0_37 = arith.constant 0 : index
    %54 = vector.load %arg4[%c0_34, %c3_35, %c0_36, %c0_37] : memref<1x4x16x16xf32, #tpu.memory_space<vmem>>, vector<1x1x16x16xf32>
    %55 = vector.shape_cast %54 : vector<1x1x16x16xf32> to vector<16x16xf32>
    %56 = arith.subf %55, %17 : vector<16x16xf32>
    %57 = math.exp %56 : vector<16x16xf32>
    %58 = arith.addf %47, %57 : vector<16x16xf32>
    %c3_i32 = arith.constant 3 : i32
    %59 = vector.broadcast %c3_i32 : i32 to vector<16x16xi32>
    %60 = arith.cmpi eq, %4, %59 : vector<16x16xi32>
    %61 = arith.select %60, %55, %50 : vector<16x16xi1>, vector<16x16xf32>
    %c3_38 = arith.constant 3 : index
    %62 = memref.load %arg3[%c3_38] : memref<4xf32, #tpu.memory_space<smem>>
    %63 = vector.broadcast %62 : f32 to vector<16x16xf32>
    %64 = arith.select %60, %63, %53 : vector<16x16xi1>, vector<16x16xf32>
    %65 = math.log %58 : vector<16x16xf32>
    %66 = arith.addf %65, %17 : vector<16x16xf32>
    %67 = arith.subf %66, %61 : vector<16x16xf32>
    %cst_39 = arith.constant 0.000000e+00 : f32
    %68 = vector.broadcast %cst_39 : f32 to vector<16x16xf32>
    %69 = arith.select %6, %64, %68 : vector<16x16xi1>, vector<16x16xf32>
    %c0_40 = arith.constant 0 : index
    %c0_41 = arith.constant 0 : index
    %70 = vector.load %arg8[%c0_40, %c0_41] : memref<16x16xf32, #tpu.memory_space<vmem>>, vector<16x16xf32>
    %71 = arith.mulf %69, %67 : vector<16x16xf32>
    %cst_42 = arith.constant 0.000000e+00 : f32
    %72 = vector.broadcast %cst_42 : f32 to vector<16x16xf32>
    %73 = arith.select %6, %71, %72 : vector<16x16xi1>, vector<16x16xf32>
    %74 = arith.addf %70, %73 : vector<16x16xf32>
    %c0_43 = arith.constant 0 : index
    %c0_44 = arith.constant 0 : index
    %75 = vector.load %arg8[%c0_43, %c0_44] : memref<16x16xf32, #tpu.memory_space<vmem>>, vector<16x16xf32>
    tpu.vector_store %arg8[%c0_43, %c0_44], %74 {strides = array<i32>} : memref<16x16xf32, #tpu.memory_space<vmem>>, vector<16x16xf32>,
    %c0_45 = arith.constant 0 : index
    %c0_46 = arith.constant 0 : index
    %76 = vector.load %arg9[%c0_45, %c0_46] : memref<16x16xf32, #tpu.memory_space<vmem>>, vector<16x16xf32>
    %77 = arith.addf %76, %69 : vector<16x16xf32>
    %c0_47 = arith.constant 0 : index
    %c0_48 = arith.constant 0 : index
    %78 = vector.load %arg9[%c0_47, %c0_48] : memref<16x16xf32, #tpu.memory_space<vmem>>, vector<16x16xf32>
    tpu.vector_store %arg9[%c0_47, %c0_48], %77 {strides = array<i32>} : memref<16x16xf32, #tpu.memory_space<vmem>>, vector<16x16xf32>,
    %c0_i32_49 = arith.constant 0 : i32
    %79 = arith.cmpi eq, %arg2, %c0_i32_49 : i32
    %80 = arith.extui %79 : i1 to i32
    %c0_i32_50 = arith.constant 0 : i32
    %81 = arith.cmpi ne, %80, %c0_i32_50 : i32
    scf.if %81 {
      %cst_51 = arith.constant 0.000000e+00 : f32
      %82 = vector.broadcast %cst_51 : f32 to vector<8x128xf32>
      %c0_52 = arith.constant 0 : index
      %c0_53 = arith.constant 0 : index
      %83 = vector.load %arg8[%c0_52, %c0_53] : memref<16x16xf32, #tpu.memory_space<vmem>>, vector<16x16xf32>
      %84 = vector.shape_cast %83 : vector<16x16xf32> to vector<1x16x16xf32>
      %cst_54 = arith.constant dense<0.000000e+00> : vector<1xf32>
      %85 = vector.multi_reduction <add>, %84, %cst_54 [1, 2] : vector<1x16x16xf32> to vector<1xf32>
      %86 = vector.shape_cast %85 : vector<1xf32> to vector<1x1x1xf32>
      %87 = vector.extract %86[0, 0, 0] : f32 from vector<1x1x1xf32>
      %88 = vector.broadcast %87 : f32 to vector<8x128xf32>
      %89 = arith.addf %82, %88 : vector<8x128xf32>
      %c0_55 = arith.constant 0 : index
      %c0_56 = arith.constant 0 : index
      %c0_57 = arith.constant 0 : index
      %c0_58 = arith.constant 0 : index
      %90 = vector.load %arg6[%c0_55, %c0_56, %c0_57, %c0_58] : memref<1x1x8x128xf32, #tpu.memory_space<vmem>>, vector<1x1x8x128xf32>
      %91 = vector.shape_cast %90 : vector<1x1x8x128xf32> to vector<8x128xf32>
      %92 = vector.shape_cast %89 : vector<8x128xf32> to vector<1x1x8x128xf32>
      tpu.vector_store %arg6[%c0_55, %c0_56, %c0_57, %c0_58], %92 {strides = array<i32>} : memref<1x1x8x128xf32, #tpu.memory_space<vmem>>, vector<1x1x8x128xf32>,
      %cst_59 = arith.constant 0.000000e+00 : f32
      %93 = vector.broadcast %cst_59 : f32 to vector<8x128xf32>
      %c0_60 = arith.constant 0 : index
      %c0_61 = arith.constant 0 : index
      %94 = vector.load %arg9[%c0_60, %c0_61] : memref<16x16xf32, #tpu.memory_space<vmem>>, vector<16x16xf32>
      %95 = vector.shape_cast %94 : vector<16x16xf32> to vector<1x16x16xf32>
      %cst_62 = arith.constant dense<0.000000e+00> : vector<1xf32>
      %96 = vector.multi_reduction <add>, %95, %cst_62 [1, 2] : vector<1x16x16xf32> to vector<1xf32>
      %97 = vector.shape_cast %96 : vector<1xf32> to vector<1x1x1xf32>
      %98 = vector.extract %97[0, 0, 0] : f32 from vector<1x1x1xf32>
      %99 = vector.broadcast %98 : f32 to vector<8x128xf32>
      %100 = arith.addf %93, %99 : vector<8x128xf32>
      %c0_63 = arith.constant 0 : index
      %c0_64 = arith.constant 0 : index
      %c0_65 = arith.constant 0 : index
      %c0_66 = arith.constant 0 : index
      %101 = vector.load %arg7[%c0_63, %c0_64, %c0_65, %c0_66] : memref<1x1x8x128xf32, #tpu.memory_space<vmem>>, vector<1x1x8x128xf32>
      %102 = vector.shape_cast %101 : vector<1x1x8x128xf32> to vector<8x128xf32>
      %103 = vector.shape_cast %100 : vector<8x128xf32> to vector<1x1x8x128xf32>
      tpu.vector_store %arg7[%c0_63, %c0_64, %c0_65, %c0_66], %103 {strides = array<i32>} : memref<1x1x8x128xf32, #tpu.memory_space<vmem>>, vector<1x1x8x128xf32>,
    } else {
    }
    return
  }
  func.func @transform_0(%arg0: i32, %arg1: i32, %arg2: i32) -> i32 {
    %c0_i32 = arith.constant 0 : i32
    %c0_i32_0 = arith.constant 0 : i32
    return %c0_i32 : i32
  }
  func.func @transform_1(%arg0: i32, %arg1: i32, %arg2: i32) -> (i32, i32, i32, i32) {
    %c1_i32 = arith.constant 1 : i32
    %0 = arith.muli %arg0, %c1_i32 : i32
    %1 = arith.addi %0, %arg2 : i32
    %c0_i32 = arith.constant 0 : i32
    %c0_i32_0 = arith.constant 0 : i32
    %c0_i32_1 = arith.constant 0 : i32
    return %arg1, %c0_i32, %1, %c0_i32_0 : i32, i32, i32, i32
  }
  func.func @transform_2(%arg0: i32, %arg1: i32, %arg2: i32) -> (i32, i32, i32) {
    %c1_i32 = arith.constant 1 : i32
    %0 = arith.muli %arg0, %c1_i32 : i32
    %1 = arith.addi %0, %arg2 : i32
    %c0_i32 = arith.constant 0 : i32
    %c0_i32_0 = arith.constant 0 : i32
    return %arg1, %1, %c0_i32 : i32, i32, i32
  }
  func.func @transform_3(%arg0: i32, %arg1: i32, %arg2: i32) -> (i32, i32, i32, i32) {
    %c0_i32 = arith.constant 0 : i32
    %c0_i32_0 = arith.constant 0 : i32
    %c0_i32_1 = arith.constant 0 : i32
    return %arg0, %arg1, %c0_i32, %c0_i32_0 : i32, i32, i32, i32
  }
  func.func @transform_4(%arg0: i32, %arg1: i32, %arg2: i32) -> (i32, i32, i32, i32) {
    %c0_i32 = arith.constant 0 : i32
    %c0_i32_0 = arith.constant 0 : i32
    %c0_i32_1 = arith.constant 0 : i32
    return %arg0, %arg1, %c0_i32, %c0_i32_0 : i32, i32, i32, i32
  }
}

</mosaic_0001>

<bundles_post_ra>
// kernel: tpu_custom_call.1
= control target key start
LH: loop header
LB: loop body
LE: loop exit
PB: predicated region body
PF: predicated region fallthrough
CT: control target
= control target key end

     0   :  { %s1464_s0 = inlined_call_operand.hbm [shape: f32[4], index: 0, kind: input, shape index: {}]   ;;  %s1465_s1 = inlined_call_operand.hbm [shape: f32[2,4,16,16], index: 1, kind: input, shape index: {}]   ;;  %s1466_s2 = inlined_call_operand.hbm [shape: s32[2,16,16], index: 2, kind: input, shape index: {}]   ;;  %s1467_s3 = inlined_call_operand.hbm [shape: f32[1,2,8,128], index: 3, kind: output, shape index: {0}]   ;;  %s1468_s4 = inlined_call_operand.hbm [shape: f32[1,2,8,128], index: 4, kind: output, shape index: {1}]  }
   0x1   :  { %1474 = sst [smem:[#allocation20_spill]] %s1464_s0 }
   0x2   :  { %1475 = sst [smem:[#allocation21_spill]] %s1465_s1 }
   0x3   :  { %10 = vsyncpa [#allocation7], 0 }
   0x4   :  { %11 = vsyncpa [#allocation5], 0 }
   0x5   :  { %13 = vsyncpa [#allocation5 + $0x1], 0 }
   0x6   :  { %14 = vsyncpa [#allocation10], 0 }
   0x7   :  { %16 = vsyncpa [#allocation10 + $0x1], 0 }
   0x8   :  { %17 = vsyncpa [#allocation6], 0 }
   0x9   :  { %19 = vsyncpa [#allocation6 + $0x1], 0 }
   0xa   :  { %20 = vsyncpa [#allocation13], 0 }
   0xb   :  { %22 = vsyncpa [#allocation13 + $0x1], 0  ;;  %s1048_s15 = smov 0   ;;  %s1050_s16 = smov 0  }
   0xc   :  { %s1052_s17 = smov 0   ;;  %s1054_s18 = smov 0  }
   0xd   :  { %s1056_s19 = smov 0   ;;  %s1058_s20 = smov 0  }
   0xe LB: > { %s674_s21 = sadd.s32 4294967295, %s1013_s20   ;;  %s675_s22 = sadd.s32 4294967294, %s1013_s20   ;;  %s1013_s20 = sphi %s1058_s20, %s28_s20   ;;  %s1009_s19 = sphi %s1056_s19, %s1495_s19   ;;  %s1005_s18 = sphi %s1054_s18, %s1494_s18   ;;  %s1001_s17 = sphi %s1052_s17, %s1493_s17   ;;  %s997_s16 = sphi %s1050_s16, %s1492_s16   ;;  %s993_s15 = sphi %s1048_s15, %s1491_s15  }
   0xf   : > { %s79_s23 = sadd.s32 1, %s1001_s17  ;;  %p86_p0 = scmp.ne.s32.totalorder %s1001_s17, %s997_s16 }
  0x10   : > { %p87_p1 = scmp.eq.s32.totalorder %s1013_s20, 0  ;;  %p92_p2 = scmp.ne.s32.totalorder %s997_s16, %s993_s15 }
  0x11   : > { %p1086_p3 = scmp.eq.s32.totalorder %s674_s21, 0  ;;  %p148_p4 = scmp.eq.s32.totalorder %s674_s21, 1 }
  0x12   : > { %p88_p5 = por %p87_p1, %p86_p0  ;;  %p154_p6 = scmp.eq.s32.totalorder %s675_s22, 1 }
  0x13   : > { %s1476_s24 = scalar_select %p1086_p3, 1, 0 }
  0x14   : > { %p1092_p7 = por %p1086_p3, %p92_p2  ;;  %p1096_p8 = por %p148_p4, %p86_p0 }
  0x15   : > { %p1100_p9 = por %p154_p6, %p92_p2  ;;  %p676_p10 = scmp.ge.s32.totalorder %s1013_s20, 1 }
  0x16   : > { %s1477_s25 = scalar_select %p1092_p7, 1, 0 }
  0x17   : > { %s1478_s26 = scalar_select %p1096_p8, 1, 0 }
  0x18   : > { %s1479_s27 = scalar_select %p1100_p9, 1, 0 }
  0x19   : > { %p189_p11 = scmp.lt.s32.totalorder %s1013_s20, 3  ;;  %p743_p1 = scmp.lt.s32.totalorder %s1013_s20, 2 }
  0x1a   : > { %s1113_s29 = sand.u32 1, %s1001_s17   ;;  %s43_s5 = sadd.s32 1, %s1009_s19 }
  0x1b   : > { %p1107_p13 = pnand %p676_p10, %p189_p11  ;;  %p1117_p4 = pnand %p743_p1, %p88_p5 }
  0x1c   : > { %s679_s6 = sshll.u32 %s1113_s29, 6  ;;  %p45_p6 = scmp.ge.s32.totalorder %s43_s5, 2 }
  0x1d   : > { %p724_p0 = pneg %p1107_p13  ;;  %s1482_s0 = sld [smem:[#allocation20_spill]] }
  0x1f   : > { %p725_p2 = pnand %p724_p0, %p1086_p3 }
  0x21   : > { %p820_p11 = pneg %p725_p2 }
  0x23   : > { %s818_s9 = scalar_lea.hbm %s1482_s0, 16 }
  0x24   : > { %p819_p10 = scmp.ne.s32.totalorder %s1482_s0, %s818_s9  ;;  %p825_p5 = scmp.lt.u32.totalorder %s818_s9, %s1482_s0 }
  0x26   : > { %p821_p12 = pnand %p820_p11, %p819_p10 }
  0x28   : > { %p822_p9 = pneg %p821_p12 }
  0x2a   : > { %p827_p1 = pnand %p825_p5, %p822_p9 }
  0x2c   : > { %830 = shalt.err (!%p827_p1)
}
  0x2d   : > { %s1015_s14 = smov [#allocation4]   ;;  %s1497_s5 = smov (%p45_p6, %s43_s5), 0 }
  0x2e   : > { %727 = dma.hbm_to_smem (!%p725_p2), %s1482_s0, 16, %s1015_s14, [#allocation7]  }
  0x2f   : > { %1483 = sst [smem:[#allocation19_spill]] %s1497_s5  ;;  %s706_s7 = sshll.u32 %s1009_s19, 10 }
  0x30   : > { %s74_s8 = ssub.s32 %s1009_s19, %s1497_s5  ;;  %s1484_s1 = sld [smem:[#allocation21_spill]] }
  0x31   : > { %p77_p9 = scmp.eq.s32.totalorder %s74_s8, 0  ;;  %s215_s12 = scalar_lea.vmem [#allocation8], %s679_s6 }
  0x32   : > { %s225_s13 = sshll.u32 %s215_s12, 4  ;;  %s212_s21 = scalar_lea.sflag [#allocation5], %s1113_s29  ;;  %s1147_s13 = int_to_ptr.vmem [resolvable:$true] %s225_s13 }
  0x33   : > { %s1152_s14 = scalar_select %p77_p9, %s1001_s17, %s79_s23  }
  0x34   : > { %p833_p0 = pneg %p1117_p4 }
  0x36   : > { %s1145_s11 = scalar_lea.hbm %s1484_s1, %s706_s7  ;;  %s836_s8 = scalar_lea.hbm %s1484_s1, 2048 }
  0x37   : > { %s831_s22 = scalar_lea.hbm %s1145_s11, 1024  ;;  %p837_p10 = scmp.lt.u32.totalorder %s1145_s11, %s1484_s1 }
  0x38   : > { %p832_p12 = scmp.ne.s32.totalorder %s1145_s11, %s831_s22  ;;  %p838_p11 = scmp.lt.u32.totalorder %s836_s8, %s831_s22 }
  0x39   : > { %p840_p1 = scmp.lt.u32.totalorder %s831_s22, %s1145_s11 }
  0x3a   : > { %p834_p2 = pnand %p833_p0, %p832_p12  ;;  %p839_p5 = por %p838_p11, %p837_p10 }
  0x3c   : > { %p835_p6 = pneg %p834_p2  ;;  %p841_p9 = por %p840_p1, %p839_p5 }
  0x3e   : > { %p842_p8 = pnand %p841_p9, %p835_p6 }
  0x40   : > { %845 = shalt.err (!%p842_p8)
}
  0x41   : > { %s846_s23 = scalar_lea.vmem %s1147_s13, 1024  ;;  %s1016_s12 = smov [#allocation8]  }
  0x42   : > { %p847_p12 = scmp.ne.s32.totalorder %s1147_s13, %s846_s23  ;;  %s851_s7 = sshll.u32 %s1016_s12, 4  ;;  %s852_s7 = int_to_ptr.vmem [resolvable:$false] %s851_s7 }
  0x43   : > { %s853_s9 = scalar_lea.vmem %s852_s7, 2048  ;;  %p854_p3 = scmp.lt.s32.totalorder %s1147_s13, %s852_s7 }
  0x44   : > { %p849_p2 = pnand %p847_p12, %p833_p0  ;;  %p855_p10 = scmp.lt.s32.totalorder %s853_s9, %s846_s23 }
  0x46   : > { %p850_p7 = pneg %p849_p2  ;;  %p856_p11 = por %p855_p10, %p854_p3 }
  0x48   : > { %p857_p5 = pnand %p856_p11, %p850_p7 }
  0x4a   : > { %860 = shalt.err (!%p857_p5)
}
  0x4b   : > { %s1017_s22 = smov 128   ;;  %s1018_s8 = smov 8  }
  0x4c   : > { %731 = dma.hbm_to_vmem [thread:$0]  (!%p1117_p4), %s1145_s11, 1024, %s1147_s13, %s212_s21, %s1017_s22, %s1017_s22, %s1018_s8  }
  0x4d   : > { %s682_s6 = sshll.u32 %s1113_s29, 4  ;;  %s707_s10 = sshll.u32 %s1009_s19, 8 }
  0x4e   : > { %s1190_s7 = scalar_lea.hbm %s1466_s2, %s707_s10  ;;  %s239_s9 = scalar_lea.vmem [#allocation9], %s682_s6 }
  0x4f   : > { %s249_s0 = sshll.u32 %s239_s9, 4  ;;  %s236_s1 = scalar_lea.sflag [#allocation10], %s1113_s29  ;;  %s1192_s0 = int_to_ptr.vmem [resolvable:$true] %s249_s0 }
  0x50   : > { %s861_s5 = scalar_lea.hbm %s1190_s7, 256  ;;  %s866_s21 = scalar_lea.hbm %s1466_s2, 512 }
  0x51   : > { %p862_p3 = scmp.ne.s32.totalorder %s1190_s7, %s861_s5  ;;  %p867_p6 = scmp.lt.u32.totalorder %s1190_s7, %s1466_s2 }
  0x52   : > { %p868_p1 = scmp.lt.u32.totalorder %s866_s21, %s861_s5  ;;  %p870_p12 = scmp.lt.u32.totalorder %s861_s5, %s1190_s7 }
  0x53   : > { %p864_p7 = pnand %p862_p3, %p833_p0 }
  0x54   : > { %p869_p9 = por %p868_p1, %p867_p6 }
  0x55   : > { %p865_p8 = pneg %p864_p7 }
  0x56   : > { %p871_p2 = por %p870_p12, %p869_p9 }
  0x58   : > { %p872_p10 = pnand %p871_p2, %p865_p8 }
  0x5a   : > { %875 = shalt.err (!%p872_p10)
}
  0x5b   : > { %s876_s6 = scalar_lea.vmem %s1192_s0, 256  ;;  %s1019_s12 = smov [#allocation9]  }
  0x5c   : > { %p877_p11 = scmp.ne.s32.totalorder %s1192_s0, %s876_s6  ;;  %s881_s9 = sshll.u32 %s1019_s12, 4  ;;  %s882_s9 = int_to_ptr.vmem [resolvable:$false] %s881_s9 }
  0x5d   : > { %s883_s11 = scalar_lea.vmem %s882_s9, 512  ;;  %p884_p7 = scmp.lt.s32.totalorder %s1192_s0, %s882_s9 }
  0x5e   : > { %p879_p5 = pnand %p877_p11, %p833_p0  ;;  %p885_p6 = scmp.lt.s32.totalorder %s883_s11, %s876_s6 }
  0x60   : > { %p880_p3 = pneg %p879_p5  ;;  %p886_p1 = por %p885_p6, %p884_p7 }
  0x62   : > { %p887_p9 = pnand %p886_p1, %p880_p3 }
  0x64   : > { %890 = shalt.err (!%p887_p9)
}
  0x65   : > { %734 = dma.hbm_to_vmem [thread:$0]  (!%p1117_p4), %s1190_s7, 256, %s1192_s0, %s236_s1, %s1017_s22, %s1017_s22, %s1018_s8  }
  0x66   : > { %261 = sbr.rel (%p1107_p13) target bundleno = 427 (0x1ab), region = 32  ;;  %p1485_p0 = scmp.ne.s32.totalorder (!%p1107_p13), %s1476_s24, 0 }
  0x6d   : > { %972 = dma.done.wait (%p1485_p0), [#allocation7], 16  }
  0x6e   : > { %974 = vsyncadd (%p1485_p0), [#allocation7], 4294967280  ;;  %s1230_s30 = sand.u32 1, %s997_s16   ;;  %p1486_p8 = scmp.ne.s32.totalorder %s1477_s25, 0 }
  0x6f   : > { %s687_s5 = sshll.u32 %s1230_s30, 6  ;;  %s268_s29 = scalar_lea.sflag [#allocation5], %s1230_s30 }
  0x70   : > { %s271_s13 = scalar_lea.vmem [#allocation8], %s687_s5 }
  0x71   : > { %976 = dma.done.wait (%p1486_p8), %s268_s29, 1024  }
  0x72   : > { %978 = vsyncadd (%p1486_p8), %s268_s29, 4294966272  ;;  %s688_s0 = sshll.u32 %s1230_s30, 4  ;;  %s277_s1 = scalar_lea.sflag [#allocation10], %s1230_s30 }
  0x73   : > { %s280_s24 = scalar_lea.vmem [#allocation9], %s688_s0 }
  0x74   : > { %980 = dma.done.wait (%p1486_p8), %s277_s1, 256  }
  0x75   : > { %982 = vsyncadd (%p1486_p8), %s277_s1, 4294967040 }
  0x76   : > { %285 = sfence }
  0x77   : > { %vm324_vm0 = vcmask 130048   ;;  %v1244_v0 = vld [vmem:[%s280_s24] sm:$0xff]  ;;  %v1020_v2 = vmov 0.0   ;;  %v1250_v3 = vld [vmem:[%s271_s13 + $0x8] sm:$0xff]  ;;  %v1254_v5 = vld [vmem:[%s271_s13 + $0x18] sm:$0xff]  ;;  %s362_s25 = sld [smem:[#allocation4]] }
  0x78   : > { %v1246_v1 = vld [vmem:[%s271_s13] sm:$0xff]  ;;  %325 = vst.msk [vmem:[#allocation2] sm:$0xff] %vm324_vm0, %v1020_v2  ;;  %326 = vst.msk [vmem:[#allocation2 + $0x8] sm:$0xff] %vm324_vm0, %v1020_v2  ;;  %v1252_v4 = vld [vmem:[%s271_s13 + $0x10] sm:$0xff]  ;;  %v339_v8 = vmax.f32 %v1250_v3, %v1254_v5  ;;  %s1274_s28 = sld [smem:[#allocation4 + $0x1]]  ;;  %vm331_vm1 = vcmp.ne.s32.totalorder %v1244_v0, 255 }
  0x79   : > { %327 = vst.msk [vmem:[#allocation3] sm:$0xff] %vm324_vm0, %v1020_v2  ;;  %328 = vst.msk [vmem:[#allocation3 + $0x8] sm:$0xff] %vm324_vm0, %v1020_v2  ;;  %v1258_v6 = vld [vmem:[%s280_s24 + $0x8] sm:$0xff]  ;;  %v338_v7 = vmax.f32 %v1246_v1, %v1252_v4  ;;  %v1264_v9 = vld [vmem:[%s271_s13 + $0x20] sm:$0xff]  ;;  %vm358_vm3 = vcmp.eq.s32.totalorder %v1244_v0, 0  ;;  %s1280_s22 = sld [smem:[#allocation4 + $0x2]] }
  0x7a   : > { %v1266_v10 = vld [vmem:[%s271_s13 + $0x28] sm:$0xff]  ;;  %v1268_v11 = vld [vmem:[%s271_s13 + $0x30] sm:$0xff]  ;;  %v1270_v12 = vld [vmem:[%s271_s13 + $0x38] sm:$0xff]  ;;  %vm332_vm2 = vcmp.ne.s32.totalorder %v1258_v6, 255  ;;  %vm359_vm4 = vcmp.eq.s32.totalorder %v1258_v6, 0  ;;  %vm374_vm5 = vcmp.eq.s32.totalorder %v1244_v0, 1 }
  0x7b   : > { %v343_v13 = vmax.f32 %v338_v7, %v1264_v9  ;;  %v344_v14 = vmax.f32 %v339_v8, %v1266_v10  ;;  %vm375_vm6 = vcmp.eq.s32.totalorder %v1258_v6, 1  ;;  %s1290_s8 = sld [smem:[#allocation4 + $0x3]]  ;;  %vm390_vm7 = vcmp.eq.s32.totalorder %v1244_v0, 2  ;;  %s689_s7 = sshll.u32 %s1230_s30, 3 }
  0x7c   : > { %vm391_vm8 = vcmp.eq.s32.totalorder %v1258_v6, 2  ;;  %vm406_vm9 = vcmp.eq.s32.totalorder %v1244_v0, 3  ;;  %vm407_vm10 = vcmp.eq.s32.totalorder %v1258_v6, 3  ;;  %v360_v7 = vsel %vm358_vm3, %v1246_v1, 0.0  ;;  %s702_s21 = sshll.u32 %s1005_s18, 7  ;;  %s308_s10 = scalar_lea.vmem [#allocation11], %s689_s7 }
  0x7d   : > { %v1283_v15 = vmax.f32 %v343_v13, %v1268_v11  ;;  %v1286_v16 = vmax.f32 %v344_v14, %v1270_v12  ;;  %v363_v21 = vstv %s362_s25  ;;  %v361_v8 = vsel %vm359_vm4, %v1250_v3, 0.0  ;;  %s499_s23 = sshll.u32 %s308_s10, 4  ;;  %s1375_s6 = scalar_lea.vmem [#allocation12], %s689_s7  ;;  %s1385_s23 = int_to_ptr.vmem [resolvable:$true] %s499_s23 }
  0x7e   : > { %v364_v27 = vsel %vm358_vm3, %v363_v21, 0.0  ;;  %v365_v28 = vsel %vm359_vm4, %v363_v21, 0.0  ;;  %v379_v31 = vstv %s1274_s28  ;;  %v376_v13 = vsel %vm374_vm5, %v1252_v4, %v360_v7  ;;  %s514_s12 = sshll.u32 %s1375_s6, 4  ;;  %s1383_s5 = scalar_lea.hbm %s1467_s3, %s702_s21  ;;  %s1387_s12 = int_to_ptr.vmem [resolvable:$true] %s514_s12 }
  0x7f   : > { %v350_v17 = vsub.f32 %v1246_v1, %v1283_v15  ;;  %v351_v18 = vsub.f32 %v1250_v3, %v1286_v16  ;;  %v366_v19 = vsub.f32 %v1252_v4, %v1283_v15  ;;  %v367_v20 = vsub.f32 %v1254_v5, %v1286_v16  ;;  %s479_s13 = scalar_lea.sflag [#allocation6], %s1230_s30  ;;  %s891_s0 = scalar_lea.vmem %s1385_s23, 128 }
  0x80   : > { %v382_v22 = vsub.f32 %v1264_v9, %v1283_v15  ;;  %v383_v23 = vsub.f32 %v1266_v10, %v1286_v16  ;;  %v398_v24 = vsub.f32 %v1268_v11, %v1283_v15  ;;  %v380_v33 = vsel %vm374_vm5, %v379_v31, %v364_v27  ;;  %v435_v42 = vld [vmem:[#allocation3] sm:$0xff]  ;;  %v436_v43 = vld [vmem:[#allocation3 + $0x8] sm:$0xff]  ;;  %p892_p13 = scmp.ne.s32.totalorder %s1385_s23, %s891_s0  ;;  %p1487_p4 = scmp.ne.s32.totalorder %s1478_s26, 0 }
  0x81   : > { %v352_v25 = vmul.f32 1.442695, %v350_v17  ;;  %v354_v26 = vmul.f32 1.442695, %v351_v18  ;;  %v368_v29 = vmul.f32 1.442695, %v366_v19  ;;  %v381_v34 = vsel %vm375_vm6, %v379_v31, %v365_v28 }
  0x82   : > { %v370_v30 = vmul.f32 1.442695, %v367_v20  ;;  %v384_v32 = vmul.f32 1.442695, %v382_v22  ;;  %v386_v35 = vmul.f32 1.442695, %v383_v23  ;;  %v395_v36 = vstv %s1280_s22  ;;  %p893_p12 = pnand %p892_p13, %p1487_p4 }
  0x83   : > { %798 = vpow2.f32 %v352_v25  ;;  %v399_v37 = vsub.f32 %v1270_v12, %v1286_v16  ;;  %v400_v38 = vmul.f32 1.442695, %v398_v24  ;;  %v396_v39 = vsel %vm390_vm7, %v395_v36, %v380_v33  ;;  %v424_v24 = vld [vmem:[#allocation2] sm:$0xff]  ;;  %s1021_s1 = smov [#allocation11]  }
  0x84   : > { %800 = vpow2.f32 %v354_v26  ;;  %v397_v40 = vsel %vm391_vm8, %v395_v36, %v381_v34  ;;  %v411_v41 = vstv %s1290_s8  ;;  %v377_v14 = vsel %vm375_vm6, %v1254_v5, %v361_v8  ;;  %p894_p2 = pneg %p893_p12  ;;  %s895_s24 = sshll.u32 %s1021_s1, 4  ;;  %s896_s24 = int_to_ptr.vmem [resolvable:$false] %s895_s24 }
  0x85   : > { %802 = vpow2.f32 %v368_v29  ;;  %v402_v44 = vmul.f32 1.442695, %v399_v37  ;;  %v412_v45 = vsel %vm406_vm9, %v411_v41, %v396_v39  ;;  %v413_v46 = vsel %vm407_vm10, %v411_v41, %v397_v40  ;;  %s897_s25 = scalar_lea.vmem %s896_s24, 256  ;;  %p898_p10 = scmp.lt.s32.totalorder %s1385_s23, %s896_s24 }
  0x86   : > { %804 = vpow2.f32 %v370_v30  ;;  %v422_v47 = vsel %vm331_vm1, %v412_v45, 0.0  ;;  %v423_v48 = vsel %vm332_vm2, %v413_v46, 0.0  ;;  %v392_v17 = vsel %vm390_vm7, %v1264_v9, %v376_v13  ;;  %p899_p11 = scmp.lt.s32.totalorder %s897_s25, %s891_s0 }
  0x87   : > { %806 = vpow2.f32 %v384_v32  ;;  %v437_v49 = vadd.f32 %v435_v42, %v422_v47  ;;  %v438_v50 = vadd.f32 %v436_v43, %v423_v48  ;;  %v393_v1 = vsel %vm391_vm8, %v1266_v10, %v377_v14  ;;  %v425_v10 = vld [vmem:[#allocation2 + $0x8] sm:$0xff] }
  0x88   : > { %808 = vpow2.f32 %v386_v35  ;;  %v408_v3 = vsel %vm406_vm9, %v1268_v11, %v392_v17  ;;  %v409_v5 = vsel %vm407_vm10, %v1270_v12, %v393_v1  ;;  %p900_p5 = por %p899_p11, %p898_p10 }
  0x89   : > { %810 = vpow2.f32 %v400_v38  ;;  %439 = vst.msk [vmem:[#allocation3] sm:$0xff] %vm324_vm0, %v437_v49  ;;  %440 = vst.msk [vmem:[#allocation3 + $0x8] sm:$0xff] %vm324_vm0, %v438_v50 }
  0x8a   : > { %812 = vpow2.f32 %v402_v44  ;;  %p901_p3 = pnand %p900_p5, %p894_p2 }
  0x8d   : > { %v799_v51 = vpop.eup %798 }
  0x8e   : > { %v801_v52 = vpop.eup %800 }
  0x8f   : > { %v803_v53 = vpop.eup %802 }
  0x90   : > { %v805_v54 = vpop.eup %804  ;;  %v372_v55 = vadd.f32 %v803_v53, %v799_v51  ;;  %v461_v12 = vld [vmem:[#allocation3] sm:$0xff] }
  0x91   : > { %v807_v56 = vpop.eup %806  ;;  %v373_v57 = vadd.f32 %v805_v54, %v801_v52  ;;  %v463_v0 = vsel %vm324_vm0, %v461_v12, 0.0 }
  0x92   : > { %v809_v58 = vpop.eup %808  ;;  %v388_v59 = vadd.f32 %v807_v56, %v372_v55 }
  0x93   : > { %v811_v60 = vpop.eup %810  ;;  %v389_v61 = vadd.f32 %v809_v58, %v373_v57 }
  0x94   : > { %v813_v62 = vpop.eup %812  ;;  %v404_v63 = vadd.f32 %v811_v60, %v388_v59 }
  0x95   : > { %v405_v2 = vadd.f32 %v813_v62, %v389_v61 }
  0x96   : > { %814 = vlog2.f32 %v404_v63 }
  0x97   : > { %816 = vlog2.f32 %v405_v2 }
  0xa0   : > { %v815_v18 = vpop.eup %814 }
  0xa1   : > { %v817_v19 = vpop.eup %816  ;;  %v415_v20 = vmul.f32 0.6931472, %v815_v18 }
  0xa2   : > { %v417_v4 = vmul.f32 0.6931472, %v817_v19 }
  0xa3   : > { %v418_v21 = vadd.f32 %v415_v20, %v1283_v15  ;;  %v462_v15 = vld [vmem:[#allocation3 + $0x8] sm:$0xff] }
  0xa4   : > { %v419_v9 = vadd.f32 %v417_v4, %v1286_v16  ;;  %v464_v33 = vsel %vm324_vm0, %v462_v15, 0.0 }
  0xa5   : > { %v420_v22 = vsub.f32 %v418_v21, %v408_v3  ;;  %v465_v34 = vadd.f32 %v464_v33, %v463_v0 }
  0xa6   : > { %v421_v23 = vsub.f32 %v419_v9, %v409_v5 }
  0xa7   : > { %v426_v25 = vmul.f32 %v422_v47, %v420_v22 }
  0xa8   : > { %v427_v26 = vmul.f32 %v423_v48, %v421_v23 }
  0xa9   : > { %v428_v27 = vsel %vm331_vm1, %v426_v25, 0.0 }
  0xaa   : > { %v429_v11 = vsel %vm332_vm2, %v427_v26, 0.0  ;;  %v430_v28 = vadd.f32 %v428_v27, %v424_v24 }
  0xab   : > { %v431_v29 = vadd.f32 %v429_v11, %v425_v10 }
  0xac   : > { %433 = vst.msk [vmem:[#allocation2] sm:$0xff] %vm324_vm0, %v430_v28 }
  0xad   : > { %434 = vst.msk [vmem:[#allocation2 + $0x8] sm:$0xff] %vm324_vm0, %v431_v29 }
  0xb3   : > { %v444_v16 = vld [vmem:[#allocation2] sm:$0xff] }
  0xb4   : > { %v445_v30 = vld [vmem:[#allocation2 + $0x8] sm:$0xff]  ;;  %v446_v31 = vsel %vm324_vm0, %v444_v16, 0.0 }
  0xb5   : > { %v447_v32 = vsel %vm324_vm0, %v445_v30, 0.0 }
  0xb6   : > { %v448_v6 = vadd.f32 %v447_v32, %v446_v31 }
  0xb8   : > { %449 = vadd.xlane.f32.xlu0 %v448_v6 }
  0xbc   : > { %466 = vadd.xlane.f32.xlu0 %v465_v34 }
 0x145   : > { %v450_v35 = vpop.xlane.xlu0 %449 }
 0x146   : > { %v451_v36 = vrot.slane %v450_v35, 4 }
 0x148   : > { %v452_v37 = vadd.f32 %v451_v36, %v450_v35 }
 0x149   : > { %v467_v38 = vpop.xlane.xlu0 %466 }
 0x14a   : > { %v453_v39 = vrot.slane %v452_v37, 2  ;;  %v468_v40 = vrot.slane %v467_v38, 4 }
 0x14c   : > { %v469_v41 = vadd.f32 %v468_v40, %v467_v38  ;;  %v454_v42 = vadd.f32 %v453_v39, %v452_v37 }
 0x14e   : > { %v470_v43 = vrot.slane %v469_v41, 2  ;;  %v455_v44 = vrot.slane %v454_v42, 1 }
 0x150   : > { %v471_v45 = vadd.f32 %v470_v43, %v469_v41  ;;  %v456_v46 = vadd.f32 %v455_v44, %v454_v42 }
 0x152   : > { %708 = vpush %v456_v46  ;;  %v472_v47 = vrot.slane %v471_v45, 1 }
 0x154   : > { %v473_v48 = vadd.f32 %v472_v47, %v471_v45 }
 0x156   : > { %710 = vpush %v473_v48 }
 0x183   : > { %s709_s29 = spop %708 }
 0x184   : > { %v458_v49 = vstv %s709_s29 }
 0x185   : > { %460 = vst [vmem:[%s308_s10] sm:$0xff] %v458_v49 }
 0x186   : > { %904 = shalt.err (!%p901_p3)
}
 0x187   : > { %s905_s28 = scalar_lea.hbm %s1383_s5, 128  ;;  %s909_s7 = scalar_lea.hbm %s1467_s3, 256 }
 0x188   : > { %p906_p7 = scmp.ne.s32.totalorder %s1383_s5, %s905_s28  ;;  %p910_p9 = scmp.lt.u32.totalorder %s1383_s5, %s1467_s3 }
 0x189   : > { %p911_p0 = scmp.lt.u32.totalorder %s909_s7, %s905_s28  ;;  %p913_p13 = scmp.lt.u32.totalorder %s905_s28, %s1383_s5 }
 0x18a   : > { %p907_p6 = pnand %p906_p7, %p1487_p4 }
 0x18b   : > { %p912_p8 = por %p911_p0, %p910_p9 }
 0x18c   : > { %p908_p1 = pneg %p907_p6 }
 0x18d   : > { %p914_p12 = por %p913_p13, %p912_p8 }
 0x18f   : > { %p915_p2 = pnand %p914_p12, %p908_p1 }
 0x191   : > { %918 = shalt.err (!%p915_p2)
}
 0x192   : > { %720 = dma.vmem_to_hbm [thread:$0]  (%p1487_p4), %s1385_s23, 128, %s1383_s5, %s479_s13  }
 0x193   : > { %s711_s11 = spop %710  ;;  %s1416_s1 = scalar_lea.hbm %s1468_s4, %s702_s21 }
 0x194   : > { %v475_v50 = vstv %s711_s11  ;;  %s484_s24 = scalar_lea.sflag [#allocation13], %s1230_s30  ;;  %s919_s25 = scalar_lea.vmem %s1387_s12, 128 }
 0x195   : > { %477 = vst [vmem:[%s1375_s6] sm:$0xff] %v475_v50  ;;  %p920_p10 = scmp.ne.s32.totalorder %s1387_s12, %s919_s25  ;;  %s1022_s28 = smov [#allocation12]  }
 0x196   : > { %s923_s22 = sshll.u32 %s1022_s28, 4  ;;  %s924_s22 = int_to_ptr.vmem [resolvable:$false] %s923_s22 }
 0x197   : > { %p921_p11 = pnand %p920_p10, %p1487_p4  ;;  %s925_s8 = scalar_lea.vmem %s924_s22, 256 }
 0x198   : > { %p926_p3 = scmp.lt.s32.totalorder %s1387_s12, %s924_s22  ;;  %p927_p7 = scmp.lt.s32.totalorder %s925_s8, %s919_s25 }
 0x199   : > { %p922_p5 = pneg %p921_p11 }
 0x19a   : > { %p928_p6 = por %p927_p7, %p926_p3 }
 0x19c   : > { %p929_p1 = pnand %p928_p6, %p922_p5 }
 0x19e   : > { %932 = shalt.err (!%p929_p1)
}
 0x19f   : > { %s933_s18 = scalar_lea.hbm %s1416_s1, 128  ;;  %s937_s23 = scalar_lea.hbm %s1468_s4, 256 }
 0x1a0   : > { %p934_p9 = scmp.ne.s32.totalorder %s1416_s1, %s933_s18  ;;  %p938_p13 = scmp.lt.u32.totalorder %s1416_s1, %s1468_s4 }
 0x1a1   : > { %p939_p12 = scmp.lt.u32.totalorder %s937_s23, %s933_s18  ;;  %p941_p10 = scmp.lt.u32.totalorder %s933_s18, %s1416_s1 }
 0x1a2   : > { %p935_p0 = pnand %p934_p9, %p1487_p4 }
 0x1a3   : > { %p940_p2 = por %p939_p12, %p938_p13 }
 0x1a4   : > { %p936_p8 = pneg %p935_p0 }
 0x1a5   : > { %p942_p11 = por %p941_p10, %p940_p2 }
 0x1a7   : > { %p943_p5 = pnand %p942_p11, %p936_p8 }
 0x1a9   : > { %946 = shalt.err (!%p943_p5)
}
 0x1aa   : > { %721 = dma.vmem_to_hbm [thread:$0]  (%p1487_p4), %s1387_s12, 128, %s1416_s1, %s484_s24  }
 0x1ab PF: > { %s526_s13 = sand.u32 1, %s993_s15   ;;  %p1488_p3 = scmp.ne.s32.totalorder %s1479_s27, 0 }
 0x1ac   : > { %p1489_p7 = scmp.ge.s32.totalorder %s1013_s20, 2  ;;  %s527_s7 = scalar_lea.sflag [#allocation6], %s526_s13 }
 0x1ae   : > { %p736_p6 = pnand %p1489_p7, %p1488_p3 }
 0x1b0   : > { %984 = dma.done.wait (!%p736_p6), %s527_s7, 128  }
 0x1b1   : > { %986 = vsyncadd (!%p736_p6), %s527_s7, 4294967168  ;;  %s536_s10 = scalar_lea.sflag [#allocation13], %s526_s13 }
 0x1b2   : > { %988 = dma.done.wait (!%p736_p6), %s536_s10, 128  }
 0x1b3   : > { %990 = vsyncadd (!%p736_p6), %s536_s10, 4294967168  ;;  %s28_s20 = sadd.s32 1, %s1013_s20   ;;  %s1490_s26 = sld [smem:[#allocation19_spill]] }
 0x1b4   : > { %p25_p1 = scmp.ge.s32.totalorder %s28_s20, 4   ;;  %s1491_s15 = smov %s997_s16 }
 0x1b5   : > { %s1492_s16 = smov %s1001_s17  ;;  %s1493_s17 = smov %s1152_s14 }
 0x1b6   : > { %s1494_s18 = smov %s1009_s19  ;;  %27 = sbr.rel (!%p25_p1) target bundleno = 14 (0xe), region = 123 }
 0x1b9   : > { %s1495_s19 = smov %s1490_s26 }
 0x1bd   :  { %541 = vsyncpa [#allocation5], 1 }
 0x1be   :  { %543 = vsyncpa [#allocation5 + $0x1], 1 }
 0x1bf   :  { %544 = vsyncpa [#allocation10], 1 }
 0x1c0   :  { %546 = vsyncpa [#allocation10 + $0x1], 1 }
 0x1c1   :  { %547 = vsyncpa [#allocation6], 1 }
 0x1c2   :  { %549 = vsyncpa [#allocation6 + $0x1], 1 }
 0x1c3   :  { %550 = vsyncpa [#allocation13], 1 }
 0x1c4   :  { %552 = vsyncpa [#allocation13 + $0x1], 1 }
 0x1c5   :  { %553 = vsyncpa [#allocation7], 1 }
 0x1c6   :  { %555 = vsyncpa [#allocation7 + $0x1], 1 }

</bundles_post_ra>
